<compile_context>
chip_gen: v6e
topology: v6e:2x2x1
jax: 0.10.0
libtpu: 0.0.40
codegen_flags: <defaults>
</compile_context>

<pallas_src>
import jax
import jax.numpy as jnp
from jax.experimental import pallas as pl
from jax.experimental.pallas import tpu as pltpu


def _rgcn_kernel(e_ref, h_ref, rwp_ref, sw_ref, o_ref):
    """One batch element per grid step.

    e_ref  : (1, K, N, N)   bf16  relation adjacencies
    h_ref  : (1, N, Fp)     f32   node features (feature-padded)
    rwp_ref: (Fp, K*Fp)     f32   packed relation weights, [:, k*Fp:(k+1)*Fp] = RW_k
    sw_ref : (Fp, Fp)       f32   self-connection weights
    o_ref  : (1, N, Fp)     f32
    """
    K = e_ref.shape[1]
    f_pad = h_ref.shape[2]

    h = h_ref[0]                                                  # (N, Fp) f32
    e_all = e_ref[0]                                              # (K, N, N) bf16

    # (1) Single packed, lane-dense matmul for all K relation weights.
    hw_all = jnp.dot(h, rwp_ref[...],
                     preferred_element_type=jnp.float32)          # (N, K*Fp) f32
    hw_all = hw_all.astype(jnp.bfloat16)                          # bf16 MXU path

    # (2) Relational message passing: rel = sum_k E_k @ (H @ RW_k).
    #     K statically-unrolled lane-dense matmuls, f32 accumulation.
    rel = jnp.dot(e_all[0], hw_all[:, :f_pad],
                  preferred_element_type=jnp.float32)             # (N, Fp) f32
    for k in range(1, K):
        rel = rel + jnp.dot(e_all[k], hw_all[:, k * f_pad:(k + 1) * f_pad],
                            preferred_element_type=jnp.float32)

    # (3) Degree normalizer: column sums of E summed over relations, +K from the
    #     per-relation identity.  One (N, N) transpose per batch, f32 math.
    e_sum_t = jnp.transpose(jnp.sum(e_all.astype(jnp.float32), axis=0))   # (N, N)
    d = 1.0 / (jnp.sum(e_sum_t, axis=1, keepdims=True) + jnp.float32(K))  # (N, 1)

    # (4) Self connection + activation; lane-dense store.
    self_term = jnp.dot(h, sw_ref[...], preferred_element_type=jnp.float32)
    o_ref[0] = jax.nn.sigmoid(d * rel + self_term).astype(o_ref.dtype)


def rgcn_conv(H, E, RW, SW):
    """Pallas RGCN convolution.

    H : (B, N, F)    f32 node embeddings
    E : (B, K, N, N) f32 relation adjacencies (E[b, k, i, j])
    RW: (F, F, K)    f32 relation weights
    SW: (F, F)       f32 self-connection weights
    returns (B, N, F) f32
    """
    b, n, f = H.shape
    _, K, _, _ = E.shape

    # Pad the feature dim to a lane-dense multiple of 128 (zero padding is exact:
    # padded rows/cols contribute nothing and are sliced off at the end).
    f_pad = ((f + 127) // 128) * 128
    pf = f_pad - f
    Hp = jnp.pad(H, ((0, 0), (0, 0), (0, pf))) if pf else H
    RWp = jnp.pad(RW, ((0, pf), (0, pf), (0, 0))) if pf else RW
    SWp = jnp.pad(SW, ((0, pf), (0, pf))) if pf else SW

    # Pack relation weights: rw_packed[m, k*Fp + nn] = RW[m, nn, k]  -> (Fp, K*Fp).
    rw_packed = jnp.transpose(RWp, (0, 2, 1)).reshape(f_pad, K * f_pad)

    # E dominates HBM traffic: ship it in bf16 (accumulation stays f32 in-kernel).
    E_bf16 = E.astype(jnp.bfloat16)

    grid_spec = pltpu.PrefetchScalarGridSpec(
        num_scalar_prefetch=0,
        grid=(b,),  # one grid step per batch element; K is handled in-kernel
        in_specs=[
            pl.BlockSpec((1, K, n, n), lambda bi: (bi, 0, 0, 0)),    # E (bf16)
            pl.BlockSpec((1, n, f_pad), lambda bi: (bi, 0, 0)),      # H
            pl.BlockSpec((f_pad, K * f_pad), lambda bi: (0, 0)),     # RW packed
            pl.BlockSpec((f_pad, f_pad), lambda bi: (0, 0)),         # SW
        ],
        out_specs=pl.BlockSpec((1, n, f_pad), lambda bi: (bi, 0, 0)),
    )

    out_padded = pl.pallas_call(
        _rgcn_kernel,
        out_shape=jax.ShapeDtypeStruct((b, n, f_pad), H.dtype),
        grid_spec=grid_spec,
        compiler_params=pltpu.CompilerParams(
            dimension_semantics=("parallel",),
            vmem_limit_bytes=32 * 1024 * 1024),
    )(E_bf16, Hp, rw_packed, SWp)

    return out_padded[..., :f]


def rgcn_ref(H, E, RW, SW):
    """Pure-JAX f32 reference mirroring the PyTorch forward exactly."""
    n = E.shape[2]
    eye = jnp.eye(n, dtype=E.dtype)
    D = 1.0 / (E + eye).sum(axis=2).sum(axis=1)                       # (B, N)
    term1 = jnp.einsum('bi,bkij,bjm,mnk->bin', D, E, H, RW)
    term2 = jnp.einsum('bij,jl->bil', H, SW)
    return jax.nn.sigmoid(term1 + term2)


if __name__ == "__main__":
    b, n, f, K = 2, 8, 32, 4   # batch, nodes, embed_dim, bond_type
    key = jax.random.PRNGKey(0)
    k1, k2, k3, k4 = jax.random.split(key, 4)

    H = jax.random.normal(k1, (b, n, f), jnp.float32)
    # Non-negative relation adjacencies (e.g. soft bond probabilities).
    E = jax.random.uniform(k2, (b, K, n, n), jnp.float32)

    # Deterministic xavier_normal_ init (PyTorch fan rules).
    rw_std = (2.0 / (f * K + f * K)) ** 0.5
    sw_std = (2.0 / (f + f)) ** 0.5
    RW = jax.random.normal(k3, (f, f, K), jnp.float32) * rw_std
    SW = jax.random.normal(k4, (f, f), jnp.float32) * sw_std

    out = jax.block_until_ready(rgcn_conv(H, E, RW, SW))
    ref = jax.block_until_ready(rgcn_ref(H, E, RW, SW))

    assert out.shape == (b, n, f)
    # Tolerance relaxed vs. pure-f32 because E / hw are streamed in bf16
    # (observed error is ~1e-3 after the sigmoid; 2e-2 leaves ample margin).
    assert jnp.allclose(out, ref, atol=2e-2, rtol=2e-2), (
        f"max abs err {jnp.max(jnp.abs(out - ref))}")
    print("KERNEL_OK")
</pallas_src>

<mosaic_0001>
module attributes {stable_mosaic.version = 11 : i64} {
  func.func @_rgcn_kernel(%arg0: i32, %arg1: memref<1x4x8x8xbf16, #tpu.memory_space<vmem>>, %arg2: memref<1x8x128xf32, #tpu.memory_space<vmem>>, %arg3: memref<128x512xf32, #tpu.memory_space<vmem>>, %arg4: memref<128x128xf32, #tpu.memory_space<vmem>>, %arg5: memref<1x8x128xf32, #tpu.memory_space<vmem>>) attributes {dimension_semantics = [#tpu.dimension_semantics<parallel>], iteration_bounds = array<i64: 2>, scalar_prefetch = 0 : i64, scratch_operands = 0 : i64, tpu.core_type = #tpu.core_type<tc>, window_params = [{transform_indices = @transform_0, window_bounds = array<i64: 1, 4, 8, 8>}, {transform_indices = @transform_1, window_bounds = array<i64: 1, 8, 128>}, {pipeline_mode = #tpu.pipeline_mode<synchronous>, transform_indices = @transform_2, window_bounds = array<i64: 128, 512>}, {pipeline_mode = #tpu.pipeline_mode<synchronous>, transform_indices = @transform_3, window_bounds = array<i64: 128, 128>}, {transform_indices = @transform_4, window_bounds = array<i64: 1, 8, 128>}]} {
    %c0 = arith.constant 0 : index
    %c0_0 = arith.constant 0 : index
    %c0_1 = arith.constant 0 : index
    %0 = vector.load %arg2[%c0, %c0_0, %c0_1] : memref<1x8x128xf32, #tpu.memory_space<vmem>>, vector<1x8x128xf32>
    %1 = vector.shape_cast %0 : vector<1x8x128xf32> to vector<8x128xf32>
    %c0_2 = arith.constant 0 : index
    %c0_3 = arith.constant 0 : index
    %c0_4 = arith.constant 0 : index
    %c0_5 = arith.constant 0 : index
    %2 = vector.load %arg1[%c0_2, %c0_3, %c0_4, %c0_5] : memref<1x4x8x8xbf16, #tpu.memory_space<vmem>>, vector<1x4x8x8xbf16>
    %3 = vector.shape_cast %2 : vector<1x4x8x8xbf16> to vector<4x8x8xbf16>
    %c0_6 = arith.constant 0 : index
    %c0_7 = arith.constant 0 : index
    %4 = vector.load %arg3[%c0_6, %c0_7] : memref<128x512xf32, #tpu.memory_space<vmem>>, vector<128x512xf32>
    %cst = arith.constant dense<0.000000e+00> : vector<8x512xf32>
    %5 = tpu.matmul %1, %4, %cst {dimension_numbers = #tpu.dot_dimension_numbers<[1], [0], [0], [1], [0, 0, 1, 1], [], []>} : vector<8x128xf32>, vector<128x512xf32>, vector<8x512xf32> -> vector<8x512xf32>
    %6 = arith.truncf %5 : vector<8x512xf32> to vector<8x512xbf16>
    %7 = vector.extract_strided_slice %3 {offsets = [0, 0, 0], sizes = [1, 8, 8], strides = [1, 1, 1]} : vector<4x8x8xbf16> to vector<1x8x8xbf16>
    %8 = vector.shape_cast %7 : vector<1x8x8xbf16> to vector<8x8xbf16>
    %9 = vector.extract_strided_slice %6 {offsets = [0, 0], sizes = [8, 128], strides = [1, 1]} : vector<8x512xbf16> to vector<8x128xbf16>
    %cst_8 = arith.constant dense<0.000000e+00> : vector<8x128xf32>
    %10 = tpu.matmul %8, %9, %cst_8 {dimension_numbers = #tpu.dot_dimension_numbers<[1], [0], [0], [1], [0, 0, 1, 1], [], []>} : vector<8x8xbf16>, vector<8x128xbf16>, vector<8x128xf32> -> vector<8x128xf32>
    %11 = vector.extract_strided_slice %3 {offsets = [1, 0, 0], sizes = [1, 8, 8], strides = [1, 1, 1]} : vector<4x8x8xbf16> to vector<1x8x8xbf16>
    %12 = vector.shape_cast %11 : vector<1x8x8xbf16> to vector<8x8xbf16>
    %13 = vector.extract_strided_slice %6 {offsets = [0, 128], sizes = [8, 128], strides = [1, 1]} : vector<8x512xbf16> to vector<8x128xbf16>
    %cst_9 = arith.constant dense<0.000000e+00> : vector<8x128xf32>
    %14 = tpu.matmul %12, %13, %cst_9 {dimension_numbers = #tpu.dot_dimension_numbers<[1], [0], [0], [1], [0, 0, 1, 1], [], []>} : vector<8x8xbf16>, vector<8x128xbf16>, vector<8x128xf32> -> vector<8x128xf32>
    %15 = arith.addf %10, %14 : vector<8x128xf32>
    %16 = vector.extract_strided_slice %3 {offsets = [2, 0, 0], sizes = [1, 8, 8], strides = [1, 1, 1]} : vector<4x8x8xbf16> to vector<1x8x8xbf16>
    %17 = vector.shape_cast %16 : vector<1x8x8xbf16> to vector<8x8xbf16>
    %18 = vector.extract_strided_slice %6 {offsets = [0, 256], sizes = [8, 128], strides = [1, 1]} : vector<8x512xbf16> to vector<8x128xbf16>
    %cst_10 = arith.constant dense<0.000000e+00> : vector<8x128xf32>
    %19 = tpu.matmul %17, %18, %cst_10 {dimension_numbers = #tpu.dot_dimension_numbers<[1], [0], [0], [1], [0, 0, 1, 1], [], []>} : vector<8x8xbf16>, vector<8x128xbf16>, vector<8x128xf32> -> vector<8x128xf32>
    %20 = arith.addf %15, %19 : vector<8x128xf32>
    %21 = vector.extract_strided_slice %3 {offsets = [3, 0, 0], sizes = [1, 8, 8], strides = [1, 1, 1]} : vector<4x8x8xbf16> to vector<1x8x8xbf16>
    %22 = vector.shape_cast %21 : vector<1x8x8xbf16> to vector<8x8xbf16>
    %23 = vector.extract_strided_slice %6 {offsets = [0, 384], sizes = [8, 128], strides = [1, 1]} : vector<8x512xbf16> to vector<8x128xbf16>
    %cst_11 = arith.constant dense<0.000000e+00> : vector<8x128xf32>
    %24 = tpu.matmul %22, %23, %cst_11 {dimension_numbers = #tpu.dot_dimension_numbers<[1], [0], [0], [1], [0, 0, 1, 1], [], []>} : vector<8x8xbf16>, vector<8x128xbf16>, vector<8x128xf32> -> vector<8x128xf32>
    %25 = arith.addf %20, %24 : vector<8x128xf32>
    %26 = arith.extf %3 : vector<4x8x8xbf16> to vector<4x8x8xf32>
    %cst_12 = arith.constant dense<0.000000e+00> : vector<8x8xf32>
    %27 = vector.multi_reduction <add>, %26, %cst_12 [0] : vector<4x8x8xf32> to vector<8x8xf32>
    %28 = tpu.transpose %27, [1, 0] : vector<8x8xf32> -> vector<8x8xf32>
    %cst_13 = arith.constant dense<0.000000e+00> : vector<8xf32>
    %29 = vector.multi_reduction <add>, %28, %cst_13 [1] : vector<8x8xf32> to vector<8xf32>
    %30 = vector.shape_cast %29 : vector<8xf32> to vector<8x1xf32>
    %cst_14 = arith.constant 4.000000e+00 : f32
    %31 = vector.broadcast %cst_14 : f32 to vector<8x1xf32>
    %32 = arith.addf %30, %31 : vector<8x1xf32>
    %cst_15 = arith.constant 1.000000e+00 : f32
    %33 = vector.broadcast %cst_15 : f32 to vector<8x1xf32>
    %34 = arith.divf %33, %32 : vector<8x1xf32>
    %c0_16 = arith.constant 0 : index
    %c0_17 = arith.constant 0 : index
    %35 = vector.load %arg4[%c0_16, %c0_17] : memref<128x128xf32, #tpu.memory_space<vmem>>, vector<128x128xf32>
    %cst_18 = arith.constant dense<0.000000e+00> : vector<8x128xf32>
    %36 = tpu.matmul %1, %35, %cst_18 {dimension_numbers = #tpu.dot_dimension_numbers<[1], [0], [0], [1], [0, 0, 1, 1], [], []>} : vector<8x128xf32>, vector<128x128xf32>, vector<8x128xf32> -> vector<8x128xf32>
    %37 = vector.broadcast %34 : vector<8x1xf32> to vector<8x128xf32>
    %38 = arith.mulf %37, %25 : vector<8x128xf32>
    %39 = arith.addf %38, %36 : vector<8x128xf32>
    %40 = arith.negf %39 : vector<8x128xf32>
    %41 = math.exp %40 : vector<8x128xf32>
    %cst_19 = arith.constant 1.000000e+00 : f32
    %42 = vector.broadcast %cst_19 : f32 to vector<8x128xf32>
    %43 = arith.addf %42, %41 : vector<8x128xf32>
    %44 = arith.divf %42, %43 : vector<8x128xf32>
    %c0_20 = arith.constant 0 : index
    %c0_21 = arith.constant 0 : index
    %c0_22 = arith.constant 0 : index
    %45 = vector.load %arg5[%c0_20, %c0_21, %c0_22] : memref<1x8x128xf32, #tpu.memory_space<vmem>>, vector<1x8x128xf32>
    %46 = vector.shape_cast %45 : vector<1x8x128xf32> to vector<8x128xf32>
    %47 = vector.shape_cast %44 : vector<8x128xf32> to vector<1x8x128xf32>
    tpu.vector_store %arg5[%c0_20, %c0_21, %c0_22], %47 {strides = array<i32>} : memref<1x8x128xf32, #tpu.memory_space<vmem>>, vector<1x8x128xf32>,
    return
  }
  func.func @transform_0(%arg0: i32) -> (i32, i32, i32, i32) {
    %c0_i32 = arith.constant 0 : i32
    %c0_i32_0 = arith.constant 0 : i32
    %c0_i32_1 = arith.constant 0 : i32
    %c0_i32_2 = arith.constant 0 : i32
    return %arg0, %c0_i32, %c0_i32_0, %c0_i32_1 : i32, i32, i32, i32
  }
  func.func @transform_1(%arg0: i32) -> (i32, i32, i32) {
    %c0_i32 = arith.constant 0 : i32
    %c0_i32_0 = arith.constant 0 : i32
    %c0_i32_1 = arith.constant 0 : i32
    return %arg0, %c0_i32, %c0_i32_0 : i32, i32, i32
  }
  func.func @transform_2(%arg0: i32) -> (i32, i32) {
    %c0_i32 = arith.constant 0 : i32
    %c0_i32_0 = arith.constant 0 : i32
    %c0_i32_1 = arith.constant 0 : i32
    return %c0_i32, %c0_i32_0 : i32, i32
  }
  func.func @transform_3(%arg0: i32) -> (i32, i32) {
    %c0_i32 = arith.constant 0 : i32
    %c0_i32_0 = arith.constant 0 : i32
    %c0_i32_1 = arith.constant 0 : i32
    return %c0_i32, %c0_i32_0 : i32, i32
  }
  func.func @transform_4(%arg0: i32) -> (i32, i32, i32) {
    %c0_i32 = arith.constant 0 : i32
    %c0_i32_0 = arith.constant 0 : i32
    %c0_i32_1 = arith.constant 0 : i32
    return %arg0, %c0_i32, %c0_i32_0 : i32, i32, i32
  }
}

</mosaic_0001>

<bundles_post_ra>
// kernel: tpu_custom_call.1
= control target key start
LH: loop header
LB: loop body
LE: loop exit
PB: predicated region body
PF: predicated region fallthrough
CT: control target
= control target key end

     0   :  { %s1682_s0 = inlined_call_operand.hbm [shape: bf16[2,4,8,8], index: 0, kind: input, shape index: {}]   ;;  %s1683_s1 = inlined_call_operand.hbm [shape: f32[2,8,128], index: 1, kind: input, shape index: {}]   ;;  %s1684_s2 = inlined_call_operand.hbm [shape: f32[128,512], index: 2, kind: input, shape index: {}]   ;;  %s1685_s3 = inlined_call_operand.hbm [shape: f32[128,128], index: 3, kind: input, shape index: {}]   ;;  %s1686_s4 = inlined_call_operand.hbm [shape: f32[2,8,128], index: 4, kind: output, shape index: {}]  }
   0x1   :  { %1691 = sst [smem:[#allocation16_spill]] %s1682_s0 }
   0x2   :  { %1692 = sst [smem:[#allocation17_spill]] %s1684_s2 }
   0x3   :  { %9 = vsyncpa [#allocation3], 0 }
   0x4   :  { %11 = vsyncpa [#allocation3 + $0x1], 0 }
   0x5   :  { %12 = vsyncpa [#allocation6], 0 }
   0x6   :  { %14 = vsyncpa [#allocation6 + $0x1], 0 }
   0x7   :  { %15 = vsyncpa [#allocation9], 0 }
   0x8   :  { %16 = vsyncpa [#allocation4], 0 }
   0x9   :  { %18 = vsyncpa [#allocation4 + $0x1], 0  ;;  %s1376_s15 = smov 0   ;;  %s1378_s16 = smov 0  }
   0xa   :  { %s1380_s17 = smov 0   ;;  %s1382_s18 = smov 0  }
   0xb LB: > { %s1397_s19 = sadd.s32 4294967295, %s1336_s18   ;;  %s956_s20 = sadd.s32 4294967294, %s1336_s18   ;;  %s1336_s18 = sphi %s1382_s18, %s1714_s18   ;;  %s1332_s17 = sphi %s1380_s17, %s1713_s17   ;;  %s1328_s16 = sphi %s1378_s16, %s1712_s16   ;;  %s1324_s15 = sphi %s1376_s15, %s1711_s15  }
   0xc   : > { %p44_p0 = scmp.ne.s32.totalorder %s1328_s16, %s1324_s15  ;;  %p1687_p1 = scmp.eq.s32.totalorder %s1397_s19, 0 }
   0xd   : > { %p142_p3 = scmp.eq.s32.totalorder %s956_s20, 1  ;;  %p957_p5 = scmp.ge.s32.totalorder %s1336_s18, 1 }
   0xe   : > { %p1406_p4 = por %p1687_p1, %p44_p0  ;;  %p149_p7 = scmp.lt.s32.totalorder %s1336_s18, 3 }
   0xf   : > { %p1411_p6 = por %p142_p3, %p44_p0  ;;  %s1338_s24 = smov [#allocation7]  }
  0x10   : > { %s1693_s21 = scalar_select %p1406_p4, 1, 0 }
  0x11   : > { %s1694_s22 = scalar_select %p1411_p6, 1, 0 }
  0x12   : > { %p1416_p8 = pnand %p957_p5, %p149_p7  ;;  %s161_s25 = sshll.u32 %s1338_s24, 4  ;;  %s162_s25 = int_to_ptr.vmem [resolvable:$true] %s161_s25 }
  0x13   : > { %s1339_s27 = smov [#allocation8]   ;;  %s1163_s29 = scalar_lea.vmem %s162_s25, 8192 }
  0x14   : > { %s1695_s23 = scalar_select %p1416_p8, 1, 0 }
  0x15   : > { %p1080_p9 = pneg %p1416_p8  ;;  %s174_s28 = sshll.u32 %s1339_s27, 4  ;;  %s175_s28 = int_to_ptr.vmem [resolvable:$true] %s174_s28 }
  0x16   : > { %p1164_p13 = scmp.ne.s32.totalorder %s162_s25, %s1163_s29  ;;  %p1171_p5 = scmp.lt.s32.totalorder %s162_s25, %s162_s25 }
  0x17   : > { %p1425_p11 = pnand %p1080_p9, %p1687_p1  ;;  %p1172_p7 = scmp.lt.s32.totalorder %s1163_s29, %s1163_s29 }
  0x19   : > { %p1154_p12 = pneg %p1425_p11  ;;  %p1173_p10 = por %p1172_p7, %p1171_p5 }
  0x1b   : > { %p1166_p0 = pnand %p1164_p13, %p1154_p12 }
  0x1d   : > { %p1167_p3 = pneg %p1166_p0 }
  0x1f   : > { %p1174_p9 = pnand %p1173_p10, %p1167_p3 }
  0x21   : > { %1177 = shalt.err (!%p1174_p9)
}
  0x22   : > { %s1340_s30 = smov 512   ;;  %s1341_s5 = smov 32  }
  0x23   : > { %s1697_s2 = sld [smem:[#allocation17_spill]]  ;;  %s1189_s8 = scalar_lea.vmem %s175_s28, 2048 }
  0x24   : > { %p1190_p1 = scmp.ne.s32.totalorder %s175_s28, %s1189_s8  ;;  %p1197_p2 = scmp.lt.s32.totalorder %s175_s28, %s175_s28 }
  0x25   : > { %p1198_p6 = scmp.lt.s32.totalorder %s1189_s8, %s1189_s8 }
  0x26   : > { %p1192_p13 = pnand %p1190_p1, %p1154_p12 }
  0x27   : > { %p1199_p5 = por %p1198_p6, %p1197_p2 }
  0x28   : > { %p1193_p0 = pneg %p1192_p13 }
  0x29   : > { %1083 = dma.hbm_to_vmem [thread:$0]  (!%p1425_p11), %s1697_s2, 8192, %s162_s25, [#allocation6], %s1340_s30, %s1340_s30, %s1341_s5  }
  0x2a   : > { %p1200_p10 = pnand %p1199_p5, %p1193_p0 }
  0x2c   : > { %1203 = shalt.err (!%p1200_p10)
}
  0x2d   : > { %s1342_s9 = smov 128   ;;  %s1343_s10 = smov 8  }
  0x2e   : > { %1086 = dma.hbm_to_vmem [thread:$0]  (!%p1425_p11), %s1685_s3, 2048, %s175_s28, [#allocation9], %s1342_s9, %s1342_s9, %s1343_s10  }
  0x2f   : > { %s1448_s13 = sadd.s32 1, %s1336_s18   ;;  %s31_s20 = sadd.s32 1, %s1332_s17 }
  0x30   : > { %s28_s14 = ssub.s32 %s1336_s18, %s1448_s13  ;;  %p38_p2 = scmp.ne.s32.totalorder %s1332_s17, %s1328_s16 }
  0x31   : > { %p29_p1 = scmp.eq.s32.totalorder %s28_s14, 0  ;;  %p39_p6 = scmp.eq.s32.totalorder %s1336_s18, 0 }
  0x32   : > { %p1698_p3 = scmp.eq.s32.totalorder %s1397_s19, 1  ;;  %p1100_p9 = scmp.lt.s32.totalorder %s1336_s18, 2 }
  0x33   : > { %s1457_s24 = scalar_select %p29_p1, %s1332_s17, %s31_s20  }
  0x34   : > { %p40_p12 = por %p39_p6, %p38_p2  ;;  %p1461_p7 = por %p1698_p3, %p38_p2 }
  0x35   : > { %s1467_s26 = sand.u32 1, %s1332_s17   ;;  %s981_s28 = sshll.u32 %s1336_s18, 8 }
  0x36   : > { %s1699_s25 = scalar_select %p1461_p7, 1, 0 }
  0x37   : > { %s961_s27 = sshll.u32 %s1467_s26, 4  ;;  %s1700_s0 = sld [smem:[#allocation16_spill]] }
  0x38   : > { %s192_s6 = scalar_lea.vmem [#allocation2], %s961_s27  ;;  %p1478_p11 = pnand %p1100_p9, %p40_p12 }
  0x39   : > { %s199_s7 = sshll.u32 %s192_s6, 4  ;;  %s209_s9 = sand.u32 1, %s1336_s18   ;;  %s1476_s7 = int_to_ptr.vmem [resolvable:$true] %s199_s7 }
  0x3a   : > { %s189_s10 = scalar_lea.sflag [#allocation3], %s1467_s26  ;;  %p1206_p0 = pneg %p1478_p11 }
  0x3d   : > { %s1474_s5 = scalar_lea.hbm %s1700_s0, %s981_s28  ;;  %s1209_s20 = scalar_lea.hbm %s1700_s0, 512 }
  0x3e   : > { %s1204_s11 = scalar_lea.hbm %s1474_s5, 256  ;;  %p1210_p1 = scmp.lt.s32.totalorder %s1474_s5, %s1700_s0 }
  0x3f   : > { %p1205_p13 = scmp.ne.s32.totalorder %s1474_s5, %s1204_s11  ;;  %p1211_p2 = scmp.lt.s32.totalorder %s1209_s20, %s1204_s11 }
  0x41   : > { %p1207_p5 = pnand %p1206_p0, %p1205_p13  ;;  %p1212_p6 = por %p1211_p2, %p1210_p1 }
  0x43   : > { %p1208_p10 = pneg %p1207_p5 }
  0x45   : > { %p1213_p12 = pnand %p1212_p6, %p1208_p10 }
  0x47   : > { %1216 = shalt.err (!%p1213_p12)
}
  0x48   : > { %s1217_s29 = scalar_lea.vmem %s1476_s7, 256  ;;  %s1344_s30 = smov [#allocation2]  }
  0x49   : > { %p1218_p3 = scmp.ne.s32.totalorder %s1476_s7, %s1217_s29  ;;  %s1222_s6 = sshll.u32 %s1344_s30, 4  ;;  %s1223_s6 = int_to_ptr.vmem [resolvable:$false] %s1222_s6 }
  0x4a   : > { %s1224_s12 = scalar_lea.vmem %s1223_s6, 512  ;;  %p1225_p5 = scmp.lt.s32.totalorder %s1476_s7, %s1223_s6 }
  0x4b   : > { %p1220_p9 = pnand %p1218_p3, %p1206_p0  ;;  %p1226_p7 = scmp.lt.s32.totalorder %s1224_s12, %s1217_s29 }
  0x4d   : > { %p1221_p13 = pneg %p1220_p9  ;;  %p1227_p4 = por %p1226_p7, %p1225_p5 }
  0x4f   : > { %p1228_p1 = pnand %p1227_p4, %p1221_p13 }
  0x51   : > { %1231 = shalt.err (!%p1228_p1)
}
  0x52   : > { %s1345_s11 = smov 64   ;;  %s1346_s14 = smov 4  }
  0x53   : > { %1090 = dma.hbm_to_vmem [thread:$0]  (!%p1478_p11), %s1474_s5, 256, %s1476_s7, %s189_s10, %s1345_s11, %s1345_s11, %s1346_s14  }
  0x54   : > { %s964_s20 = sshll.u32 %s1467_s26, 3  ;;  %s965_s27 = sshll.u32 %s1336_s18, 7 }
  0x55   : > { %s1515_s30 = scalar_lea.hbm %s1683_s1, %s965_s27  ;;  %s213_s6 = scalar_lea.vmem [#allocation5], %s964_s20 }
  0x56   : > { %s220_s12 = sshll.u32 %s213_s6, 4  ;;  %s210_s0 = scalar_lea.sflag [#allocation6], %s209_s9  ;;  %s221_s12 = int_to_ptr.vmem [resolvable:$true] %s220_s12 }
  0x57   : > { %s1232_s2 = scalar_lea.hbm %s1515_s30, 128  ;;  %s1237_s7 = scalar_lea.hbm %s1683_s1, 256 }
  0x58   : > { %p1233_p4 = scmp.ne.s32.totalorder %s1515_s30, %s1232_s2  ;;  %p1238_p2 = scmp.lt.s32.totalorder %s1515_s30, %s1683_s1 }
  0x59   : > { %p1239_p6 = scmp.lt.s32.totalorder %s1237_s7, %s1232_s2 }
  0x5a   : > { %p1235_p7 = pnand %p1233_p4, %p1206_p0 }
  0x5b   : > { %p1240_p12 = por %p1239_p6, %p1238_p2 }
  0x5c   : > { %p1236_p10 = pneg %p1235_p7 }
  0x5e   : > { %p1241_p3 = pnand %p1240_p12, %p1236_p10 }
  0x60   : > { %1244 = shalt.err (!%p1241_p3)
}
  0x61   : > { %s1245_s14 = scalar_lea.vmem %s221_s12, 128  ;;  %s1347_s9 = smov [#allocation5]  }
  0x62   : > { %p1246_p9 = scmp.ne.s32.totalorder %s221_s12, %s1245_s14  ;;  %s1250_s20 = sshll.u32 %s1347_s9, 4  ;;  %s1251_s20 = int_to_ptr.vmem [resolvable:$false] %s1250_s20 }
  0x63   : > { %s1252_s27 = scalar_lea.vmem %s1251_s20, 256  ;;  %p1253_p1 = scmp.lt.s32.totalorder %s221_s12, %s1251_s20 }
  0x64   : > { %p1248_p13 = pnand %p1246_p9, %p1206_p0  ;;  %p1254_p4 = scmp.lt.s32.totalorder %s1252_s27, %s1245_s14 }
  0x66   : > { %p1249_p5 = pneg %p1248_p13  ;;  %p1255_p7 = por %p1254_p4, %p1253_p1 }
  0x68   : > { %p1256_p8 = pnand %p1255_p7, %p1249_p5 }
  0x6a   : > { %1259 = shalt.err (!%p1256_p8)
}
  0x6b   : > { %1093 = dma.hbm_to_vmem [thread:$0]  (!%p1478_p11), %s1515_s30, 128, %s221_s12, %s210_s0  }
  0x6c   : > { %p1702_p10 = scmp.ne.s32.totalorder %s1695_s23, 0 }
  0x6d   : > { %s1540_s2 = sand.u32 (!%p1702_p10), 1, %s1328_s16   ;;  %p1703_p0 = scmp.ne.s32.totalorder (!%p1702_p10), %s1693_s21, 0 }
  0x6e   : > { %229 = sbr.rel (%p1702_p10) target bundleno = 628 (0x274), region = 36  ;;  %s967_s28 = sshll.u32 (!%p1702_p10), %s1540_s2, 4 }
  0x6f   : > { %s232_s29 = scalar_lea.sflag (!%p1702_p10), [#allocation3], %s1540_s2  ;;  %s1544_s6 = scalar_lea.vmem (!%p1702_p10), [#allocation2], %s967_s28 }
  0x73   : > { %1303 = dma.done.wait (%p1703_p0), %s232_s29, 256  }
  0x74   : > { %1305 = vsyncadd (%p1703_p0), %s232_s29, 4294967040  ;;  %s240_s0 = sand.u32 1, %s1397_s19   ;;  %s968_s23 = sshll.u32 %s1540_s2, 3 }
  0x75   : > { %s241_s8 = scalar_lea.sflag [#allocation6], %s240_s0  ;;  %s1554_s30 = scalar_lea.vmem [#allocation5], %s968_s23 }
  0x76   : > { %1307 = dma.done.wait (%p1703_p0), %s241_s8, 128  }
  0x77   : > { %1309 = vsyncadd (%p1703_p0), %s241_s8, 4294967168  ;;  %p1704_p8 = scmp.eq.s32.totalorder %s1397_s19, 0 }
  0x79   : > { %1311 = dma.done.wait (%p1704_p8), [#allocation6], 8192   ;;  %p1705_p11 = pmov %p1704_p8 }
  0x7a   : > { %p1706_p2 = pmov %p1704_p8 }
  0x7b   : > { %1313 = vsyncadd (%p1705_p11), [#allocation6], 4294959104 }
  0x7c   : > { %1315 = dma.done.wait (%p1706_p2), [#allocation9], 2048   ;;  %p1707_p6 = pmov %p1706_p2 }
  0x7d   : > { %v1348_v0 = vmov 0.0   ;;  %v349_v1 = vld [vmem:[#allocation7 + $0x1e8] sm:$0xff]  ;;  %v348_v2 = vld [vmem:[#allocation7 + $0x1e0] sm:$0xff]  ;;  %v351_v8 = vld [vmem:[#allocation7 + $0x1f8] sm:$0xff]  ;;  %vm498_vm0 = vcmask 64512   ;;  %vm1349_vm1 = vmmov 0  }
  0x7e   : > { %1317 = vsyncadd (%p1707_p6), [#allocation9], 4294965248  ;;  %416 = vmatprep.mubr.f32.mxu0 %v1348_v0  ;;  %487 = vmatprep.mubr.f32.mxu1 %v1348_v0  ;;  %v345_v3 = vld [vmem:[#allocation7 + $0x1c8] sm:$0xff]  ;;  %v344_v4 = vld [vmem:[#allocation7 + $0x1c0] sm:$0xff]  ;;  %vm502_vm2 = vcmask 1043456   ;;  %s978_s21 = sshll.u32 %s1397_s19, 7 }
  0x7f   : > { %352 = vmatprep.subr.mxu0 %v349_v1  ;;  %v341_v5 = vld [vmem:[#allocation7 + $0x1a8] sm:$0xff]  ;;  %v340_v6 = vld [vmem:[#allocation7 + $0x1a0] sm:$0xff]  ;;  %423 = vmatprep.subr.mxu1 %v351_v8  ;;  %v350_v10 = vld [vmem:[#allocation7 + $0x1f0] sm:$0xff]  ;;  %s281_s12 = scalar_lea.vmem [#allocation10], %s968_s23  ;;  %s1645_s10 = scalar_lea.hbm %s1686_s4, %s978_s21 }
  0x80   : > { %353 = vmatpush1.msra.mxu0 %v348_v2  ;;  %v337_v7 = vld [vmem:[#allocation7 + $0x188] sm:$0xff]  ;;  %v336_v9 = vld [vmem:[#allocation7 + $0x180] sm:$0xff]  ;;  %v347_v11 = vld [vmem:[#allocation7 + $0x1d8] sm:$0xff]  ;;  %424 = vmatpush1.msra.mxu1 %v350_v10  ;;  %s844_s26 = sshll.u32 %s281_s12, 4  ;;  %s831_s11 = scalar_lea.sflag [#allocation4], %s1540_s2  ;;  %s845_s26 = int_to_ptr.vmem [resolvable:$true] %s844_s26 }
  0x81   : > { %354 = vmatprep.subr.mxu0 %v345_v3  ;;  %v333_v12 = vld [vmem:[#allocation7 + $0x168] sm:$0xff]  ;;  %v346_v13 = vld [vmem:[#allocation7 + $0x1d0] sm:$0xff]  ;;  %v332_v14 = vld [vmem:[#allocation7 + $0x160] sm:$0xff]  ;;  %425 = vmatprep.subr.mxu1 %v347_v11  ;;  %s1260_s14 = scalar_lea.vmem %s845_s26, 128  ;;  %p1708_p3 = scmp.ne.s32.totalorder %s1699_s25, 0 }
  0x82   : > { %355 = vmatpush1.msra.mxu0 %v344_v4  ;;  %v343_v15 = vld [vmem:[#allocation7 + $0x1b8] sm:$0xff]  ;;  %v342_v16 = vld [vmem:[#allocation7 + $0x1b0] sm:$0xff]  ;;  %v329_v17 = vld [vmem:[#allocation7 + $0x148] sm:$0xff]  ;;  %426 = vmatpush1.msra.mxu1 %v346_v13  ;;  %p1261_p12 = scmp.ne.s32.totalorder %s845_s26, %s1260_s14  ;;  %s1350_s9 = smov [#allocation10]  }
  0x83   : > { %356 = vmatprep.subr.mxu0 %v341_v5  ;;  %v339_v18 = vld [vmem:[#allocation7 + $0x198] sm:$0xff]  ;;  %v328_v19 = vld [vmem:[#allocation7 + $0x140] sm:$0xff]  ;;  %427 = vmatprep.subr.mxu1 %v343_v15  ;;  %v338_v20 = vld [vmem:[#allocation7 + $0x190] sm:$0xff]  ;;  %s1264_s20 = sshll.u32 %s1350_s9, 4  ;;  %s1265_s20 = int_to_ptr.vmem [resolvable:$false] %s1264_s20 }
  0x84   : > { %357 = vmatpush1.msra.mxu0 %v340_v6  ;;  %v325_v21 = vld [vmem:[#allocation7 + $0x128] sm:$0xff]  ;;  %428 = vmatpush1.msra.mxu1 %v342_v16  ;;  %v335_v22 = vld [vmem:[#allocation7 + $0x178] sm:$0xff]  ;;  %v324_v23 = vld [vmem:[#allocation7 + $0x120] sm:$0xff]  ;;  %p1262_p9 = pnand %p1261_p12, %p1708_p3  ;;  %s1266_s19 = scalar_lea.vmem %s1265_s20, 256 }
  0x85   : > { %358 = vmatprep.subr.mxu0 %v337_v7  ;;  %429 = vmatprep.subr.mxu1 %v339_v18  ;;  %v334_v24 = vld [vmem:[#allocation7 + $0x170] sm:$0xff]  ;;  %v321_v25 = vld [vmem:[#allocation7 + $0x108] sm:$0xff]  ;;  %v331_v26 = vld [vmem:[#allocation7 + $0x158] sm:$0xff]  ;;  %p1267_p5 = scmp.lt.s32.totalorder %s845_s26, %s1265_s20  ;;  %p1268_p1 = scmp.lt.s32.totalorder %s1266_s19, %s1260_s14 }
  0x86   : > { %359 = vmatpush1.msra.mxu0 %v336_v9  ;;  %430 = vmatpush1.msra.mxu1 %v338_v20  ;;  %v320_v27 = vld [vmem:[#allocation7 + $0x100] sm:$0xff]  ;;  %v330_v28 = vld [vmem:[#allocation7 + $0x150] sm:$0xff]  ;;  %v317_v29 = vld [vmem:[#allocation7 + $0xe8] sm:$0xff]  ;;  %p1263_p13 = pneg %p1262_p9 }
  0x87   : > { %360 = vmatprep.subr.mxu0 %v333_v12  ;;  %431 = vmatprep.subr.mxu1 %v335_v22  ;;  %v327_v30 = vld [vmem:[#allocation7 + $0x138] sm:$0xff]  ;;  %v316_v31 = vld [vmem:[#allocation7 + $0xe0] sm:$0xff]  ;;  %v326_v32 = vld [vmem:[#allocation7 + $0x130] sm:$0xff]  ;;  %p1269_p4 = por %p1268_p1, %p1267_p5 }
  0x88   : > { %361 = vmatpush1.msra.mxu0 %v332_v14  ;;  %432 = vmatpush1.msra.mxu1 %v334_v24  ;;  %v313_v33 = vld [vmem:[#allocation7 + $0xc8] sm:$0xff]  ;;  %v323_v34 = vld [vmem:[#allocation7 + $0x118] sm:$0xff]  ;;  %v312_v35 = vld [vmem:[#allocation7 + $0xc0] sm:$0xff] }
  0x89   : > { %362 = vmatprep.subr.mxu0 %v329_v17  ;;  %433 = vmatprep.subr.mxu1 %v331_v26  ;;  %v322_v36 = vld [vmem:[#allocation7 + $0x110] sm:$0xff]  ;;  %v309_v37 = vld [vmem:[#allocation7 + $0xa8] sm:$0xff]  ;;  %v319_v38 = vld [vmem:[#allocation7 + $0xf8] sm:$0xff]  ;;  %p1270_p7 = pnand %p1269_p4, %p1263_p13 }
  0x8a   : > { %363 = vmatpush1.msra.mxu0 %v328_v19  ;;  %434 = vmatpush1.msra.mxu1 %v330_v28  ;;  %v308_v39 = vld [vmem:[#allocation7 + $0xa0] sm:$0xff]  ;;  %v305_v40 = vld [vmem:[#allocation7 + $0x88] sm:$0xff]  ;;  %v318_v41 = vld [vmem:[#allocation7 + $0xf0] sm:$0xff] }
  0x8b   : > { %364 = vmatprep.subr.mxu0 %v325_v21  ;;  %435 = vmatprep.subr.mxu1 %v327_v30  ;;  %v304_v42 = vld [vmem:[#allocation7 + $0x80] sm:$0xff]  ;;  %v301_v43 = vld [vmem:[#allocation7 + $0x68] sm:$0xff]  ;;  %v315_v44 = vld [vmem:[#allocation7 + $0xd8] sm:$0xff] }
  0x8c   : > { %365 = vmatpush1.msra.mxu0 %v324_v23  ;;  %436 = vmatpush1.msra.mxu1 %v326_v32  ;;  %v314_v45 = vld [vmem:[#allocation7 + $0xd0] sm:$0xff]  ;;  %v311_v46 = vld [vmem:[#allocation7 + $0xb8] sm:$0xff]  ;;  %v300_v52 = vld [vmem:[#allocation7 + $0x60] sm:$0xff] }
  0x8d   : > { %366 = vmatprep.subr.mxu0 %v321_v25  ;;  %437 = vmatprep.subr.mxu1 %v323_v34  ;;  %v1571_v47 = vld [vmem:[%s1544_s6] sm:$0xf]  ;;  %v1574_v48 = vld [vmem:[%s1544_s6 + $0x4] sm:$0xf]  ;;  %v1577_v49 = vld [vmem:[%s1544_s6 + $0x8] sm:$0xf] }
  0x8e   : > { %367 = vmatpush1.msra.mxu0 %v320_v27  ;;  %438 = vmatpush1.msra.mxu1 %v322_v36  ;;  %v1580_v50 = vld [vmem:[%s1544_s6 + $0xc] sm:$0xf]  ;;  %v686_v51 = vunpack.c.l.bf16 %v1571_v47  ;;  %v310_v53 = vld [vmem:[#allocation7 + $0xb0] sm:$0xff]  ;;  %v687_v54 = vunpack.c.l.bf16 %v1574_v48  ;;  %v688_v55 = vunpack.c.l.bf16 %v1577_v49  ;;  %v296_v60 = vld [vmem:[#allocation7 + $0x40] sm:$0xff] }
  0x8f   : > { %368 = vmatprep.subr.mxu0 %v317_v29  ;;  %439 = vmatprep.subr.mxu1 %v319_v38  ;;  %v689_v56 = vunpack.c.l.bf16 %v1580_v50  ;;  %v297_v57 = vld [vmem:[#allocation7 + $0x48] sm:$0xff]  ;;  %v307_v58 = vld [vmem:[#allocation7 + $0x98] sm:$0xff]  ;;  %v306_v61 = vld [vmem:[#allocation7 + $0x90] sm:$0xff] }
  0x90   : > { %369 = vmatpush1.msra.mxu0 %v316_v31  ;;  %440 = vmatpush1.msra.mxu1 %v318_v41  ;;  %v690_v59 = vsel %vm498_vm0, %v686_v51, 0.0  ;;  %v691_v62 = vsel %vm498_vm0, %v687_v54, 0.0  ;;  %v693_v63 = vsel %vm498_vm0, %v688_v55, 0.0  ;;  %v293_v1 = vld [vmem:[#allocation7 + $0x28] sm:$0xff]  ;;  %v303_v2 = vld [vmem:[#allocation7 + $0x78] sm:$0xff]  ;;  %v292_v4 = vld [vmem:[#allocation7 + $0x20] sm:$0xff] }
  0x91   : > { %370 = vmatprep.subr.mxu0 %v313_v33  ;;  %441 = vmatprep.subr.mxu1 %v315_v44  ;;  %v692_v3 = vadd.f32 %v691_v62, %v690_v59  ;;  %v302_v5 = vld [vmem:[#allocation7 + $0x70] sm:$0xff]  ;;  %v695_v6 = vsel %vm498_vm0, %v689_v56, 0.0  ;;  %v289_v7 = vld [vmem:[#allocation7 + $0x8] sm:$0xff]  ;;  %v299_v8 = vld [vmem:[#allocation7 + $0x58] sm:$0xff] }
  0x92   : > { %371 = vmatpush1.msra.mxu0 %v312_v35  ;;  %442 = vmatpush1.msra.mxu1 %v314_v45  ;;  %v288_v10 = vld [vmem:[#allocation7] sm:$0xff]  ;;  %v298_v11 = vld [vmem:[#allocation7 + $0x50] sm:$0xff]  ;;  %v295_v13 = vld [vmem:[#allocation7 + $0x38] sm:$0xff] }
  0x93   : > { %372 = vmatprep.subr.mxu0 %v309_v37  ;;  %443 = vmatprep.subr.mxu1 %v311_v46  ;;  %v694_v9 = vadd.f32 %v693_v63, %v692_v3  ;;  %v1591_v12 = vld [vmem:[%s1554_s30] sm:$0xff]  ;;  %v748_v20 = vld [vmem:[#allocation8 + $0x68] sm:$0xff]  ;;  %v747_v21 = vld [vmem:[#allocation8 + $0x60] sm:$0xff] }
  0x94   : > { %373 = vmatpush1.msra.mxu0 %v308_v39  ;;  %444 = vmatpush1.msra.mxu1 %v310_v53  ;;  %v294_v15 = vld [vmem:[#allocation7 + $0x30] sm:$0xff]  ;;  %v291_v16 = vld [vmem:[#allocation7 + $0x18] sm:$0xff]  ;;  %v744_v24 = vld [vmem:[#allocation8 + $0x48] sm:$0xff] }
  0x95   : > { %374 = vmatprep.subr.mxu0 %v305_v40  ;;  %445 = vmatprep.subr.mxu1 %v307_v58  ;;  %v696_v14 = vadd.f32 %v695_v6, %v694_v9  ;;  %v290_v17 = vld [vmem:[#allocation7 + $0x10] sm:$0xff]  ;;  %v750_v18 = vld [vmem:[#allocation8 + $0x78] sm:$0xff]  ;;  %v743_v25 = vld [vmem:[#allocation8 + $0x40] sm:$0xff] }
  0x96   : > { %375 = vmatpush1.msra.mxu0 %v304_v42  ;;  %446 = vmatpush1.msra.mxu1 %v306_v61  ;;  %v749_v19 = vld [vmem:[#allocation8 + $0x70] sm:$0xff]  ;;  %v746_v22 = vld [vmem:[#allocation8 + $0x58] sm:$0xff]  ;;  %v740_v28 = vld [vmem:[#allocation8 + $0x28] sm:$0xff] }
  0x97   : > { %376 = vmatprep.subr.mxu0 %v301_v43  ;;  %447 = vmatprep.subr.mxu1 %v303_v2  ;;  %v745_v23 = vld [vmem:[#allocation8 + $0x50] sm:$0xff]  ;;  %v742_v26 = vld [vmem:[#allocation8 + $0x38] sm:$0xff]  ;;  %v739_v29 = vld [vmem:[#allocation8 + $0x20] sm:$0xff] }
  0x98   : > { %377 = vmatpush1.msra.mxu0 %v300_v52  ;;  %448 = vmatpush1.msra.mxu1 %v302_v5  ;;  %v741_v27 = vld [vmem:[#allocation8 + $0x30] sm:$0xff]  ;;  %v738_v30 = vld [vmem:[#allocation8 + $0x18] sm:$0xff]  ;;  %v736_v32 = vld [vmem:[#allocation8 + $0x8] sm:$0xff] }
  0x99   : > { %378 = vmatprep.subr.mxu0 %v297_v57  ;;  %449 = vmatprep.subr.mxu1 %v299_v8  ;;  %v737_v31 = vld [vmem:[#allocation8 + $0x10] sm:$0xff]  ;;  %v735_v33 = vld [vmem:[#allocation8] sm:$0xff] }
  0x9a   : > { %379 = vmatpush1.msra.mxu0 %v296_v60  ;;  %450 = vmatpush1.msra.mxu1 %v298_v11 }
  0x9b   : > { %380 = vmatprep.subr.mxu0 %v293_v1  ;;  %451 = vmatprep.subr.mxu1 %v295_v13 }
  0x9c   : > { %381 = vmatpush1.msra.mxu0 %v292_v4  ;;  %452 = vmatpush1.msra.mxu1 %v294_v15 }
  0x9d   : > { %382 = vmatprep.subr.mxu0 %v289_v7  ;;  %697 = vxpose.xlu0.b32.start.end [1/1] (short) (narrow) %v696_v14, 8 }
  0x9e   : > { %383 = vmatpush1.msra.mxu0 %v288_v10  ;;  %453 = vmatprep.subr.mxu1 %v291_v16 }
  0x9f   : > { %417 = vmatmul.mubr.f32.vlgmr.msra.gmra.mxu0 %v1591_v12  ;;  %1031 = vmatprep.subr.mxu0 %v1348_v0 }
  0xa0   : > { %454 = vmatpush1.msra.mxu1 %v290_v17  ;;  %1032 = vmatpush3.msra.mxu0 %v750_v18 }
  0xa1   : > { %488 = vmatmul.mubr.f32.vlgmr.msra.gmra.mxu1 %v1591_v12  ;;  %1007 = vmatprep.subr.bf16.mxu1 %v1348_v0 }
  0xa2   : > { %1033 = vmatprep.subr.mxu0 %v1348_v0  ;;  %1009 = vmatprep.mubr.msk.bf16.mxu1 %vm1349_vm1, %v1348_v0 }
  0xa3   : > { %1034 = vmatpush3.msra.mxu0 %v749_v19  ;;  %1063 = vmatprep.mubr.msk.f32.mxu0 %vm1349_vm1, %v1348_v0 }
  0xa4   : > { %1035 = vmatprep.subr.mxu0 %v1348_v0 }
  0xa5   : > { %1036 = vmatpush3.msra.mxu0 %v748_v20 }
  0xa6   : > { %1037 = vmatprep.subr.mxu0 %v1348_v0 }
  0xa7   : > { %1038 = vmatpush3.msra.mxu0 %v747_v21 }
  0xa8   : > { %1039 = vmatprep.subr.mxu0 %v1348_v0 }
  0xa9   : > { %1040 = vmatpush3.msra.mxu0 %v746_v22 }
  0xaa   : > { %1041 = vmatprep.subr.mxu0 %v1348_v0 }
  0xab   : > { %1042 = vmatpush3.msra.mxu0 %v745_v23 }
  0xac   : > { %1043 = vmatprep.subr.mxu0 %v1348_v0 }
  0xad   : > { %1044 = vmatpush3.msra.mxu0 %v744_v24 }
  0xae   : > { %1045 = vmatprep.subr.mxu0 %v1348_v0 }
  0xaf   : > { %1046 = vmatpush3.msra.mxu0 %v743_v25 }
  0xb0   : > { %1047 = vmatprep.subr.mxu0 %v1348_v0 }
  0xb1   : > { %1048 = vmatpush3.msra.mxu0 %v742_v26 }
  0xb2   : > { %1049 = vmatprep.subr.mxu0 %v1348_v0 }
  0xb3   : > { %1050 = vmatpush3.msra.mxu0 %v741_v27 }
  0xb4   : > { %1051 = vmatprep.subr.mxu0 %v1348_v0 }
  0xb5   : > { %1052 = vmatpush3.msra.mxu0 %v740_v28 }
  0xb6   : > { %1053 = vmatprep.subr.mxu0 %v1348_v0 }
  0xb7   : > { %1054 = vmatpush3.msra.mxu0 %v739_v29 }
  0xb8   : > { %1055 = vmatprep.subr.mxu0 %v1348_v0 }
  0xb9   : > { %1056 = vmatpush3.msra.mxu0 %v738_v30 }
  0xba   : > { %1057 = vmatprep.subr.mxu0 %v1348_v0 }
  0xbb   : > { %1058 = vmatpush3.msra.mxu0 %v737_v31 }
  0xbc   : > { %1059 = vmatprep.subr.mxu0 %v1348_v0 }
  0xbd   : > { %1060 = vmatpush3.msra.mxu0 %v736_v32 }
  0xbe   : > { %1061 = vmatprep.subr.mxu0 %v1348_v0 }
  0xbf   : > { %1062 = vmatpush3.msra.mxu0 %v735_v33 }
  0xc0   : > { %1064 = vmatmul.mubr.f32.vlgmr.msra.gmra.mxu0 %v1591_v12 }
 0x119   : > { %v713_v34 = vpop.trf.xlu0 }
 0x11a   : > { %v729_v35 = vsel %vm498_vm0, %v713_v34, 0.0 }
 0x11b   : > { %730 = vadd.xlane.f32.xlu0 %v729_v35 }
 0x15f   : > { %v418_v36 = vpop.f32.mrf.mxu0 }
 0x160   : > { %v494_v39 = vpack.c.bf16 %v418_v36, %v418_v36 }
 0x161   : > { %v420_v37 = vpop.f32.mrf.mxu0  ;;  %v489_v41 = vpop.f32.mrf.mxu1 }
 0x162   : > { %v495_v38 = vpack.c.bf16 %v420_v37, %v420_v37  ;;  %v550_v42 = vsel %vm502_vm2, %v494_v39, 0  ;;  %v496_v43 = vpack.c.bf16 %v489_v41, %v489_v41 }
 0x163   : > { %v491_v45 = vpop.f32.mrf.mxu1 }
 0x164   : > { %v504_v40 = vsel %vm502_vm2, %v495_v38, 0  ;;  %v596_v44 = vsel %vm502_vm2, %v496_v43, 0  ;;  %v497_v46 = vpack.c.bf16 %v491_v45, %v491_v45 }
 0x165   : > { %1008 = vmatpush3.bf16.msra.mxu1 %v504_v40 }
 0x166   : > { %1013 = vmatprep.subr.bf16.mxu1 %v1348_v0 }
 0x168   : > { %1010 = vmatmul.mubr.msk.bf16.vlgmr.msra.gmra.mxu1 %vm498_vm0, %v1574_v48  ;;  %v643_v48 = vsel %vm502_vm2, %v497_v46, 0 }
 0x169   : > { %1014 = vmatpush3.bf16.msra.mxu1 %v550_v42  ;;  %1015 = vmatprep.mubr.msk.bf16.mxu1 %vm1349_vm1, %v1348_v0 }
 0x16a   : > { %1019 = vmatprep.subr.bf16.mxu1 %v1348_v0 }
 0x170   : > { %1016 = vmatmul.mubr.msk.bf16.vlgmr.msra.gmra.mxu1 %vm498_vm0, %v1571_v47 }
 0x171   : > { %1020 = vmatpush3.bf16.msra.mxu1 %v596_v44  ;;  %1021 = vmatprep.mubr.msk.bf16.mxu1 %vm1349_vm1, %v1348_v0 }
 0x172   : > { %1025 = vmatprep.subr.bf16.mxu1 %v1348_v0 }
 0x178   : > { %1022 = vmatmul.mubr.msk.bf16.vlgmr.msra.gmra.mxu1 %vm498_vm0, %v1577_v49 }
 0x179   : > { %1026 = vmatpush3.bf16.msra.mxu1 %v643_v48  ;;  %1027 = vmatprep.mubr.msk.bf16.mxu1 %vm1349_vm1, %v1348_v0 }
 0x180   : > { %1028 = vmatmul.mubr.msk.bf16.vlgmr.msra.gmra.mxu1 %vm498_vm0, %v1580_v50  ;;  %v817_v47 = vpop.f32.mrf.mxu0 }
 0x182   : > { %v1065_v51 = vpop.f32.mrf.mxu0 }
 0x1a4   : > { %v731_v55 = vpop.xlane.xlu0 %730 }
 0x1a5   : > { %v732_v57 = vadd.f32 4.0, %v731_v55 }
 0x1a7   : > { %1146 = vrcp.f32 %v732_v57 }
 0x1b4   : > { %v1147_v2 = vpop.eup %1146 }
 0x228   : > { %v540_v52 = vpop.f32.mrf.mxu1 }
 0x22a   : > { %v1011_v53 = vpop.f32.mrf.mxu1 }
 0x22c   : > { %v543_v54 = vpop.f32.mrf.mxu1 }
 0x22e   : > { %v1012_v56 = vpop.f32.mrf.mxu1 }
 0x230   : > { %v586_v58 = vpop.f32.mrf.mxu1 }
 0x231   : > { %v587_v0 = vadd.f32 %v586_v58, %v540_v52 }
 0x232   : > { %v1017_v59 = vpop.f32.mrf.mxu1 }
 0x234   : > { %v589_v60 = vpop.f32.mrf.mxu1 }
 0x236   : > { %v1018_v49 = vpop.f32.mrf.mxu1 }
 0x238   : > { %v632_v61 = vpop.f32.mrf.mxu1 }
 0x239   : > { %v638_v50 = vadd.f32 %v632_v61, %v587_v0 }
 0x23a   : > { %v1023_v62 = vpop.f32.mrf.mxu1 }
 0x23c   : > { %v635_v63 = vpop.f32.mrf.mxu1 }
 0x23e   : > { %v1024_v1 = vpop.f32.mrf.mxu1 }
 0x240   : > { %v679_v3 = vpop.f32.mrf.mxu1 }
 0x241   : > { %v685_v4 = vadd.f32 %v679_v3, %v638_v50 }
 0x242   : > { %v1029_v5 = vpop.f32.mrf.mxu1 }
 0x243   : > { %v821_v6 = vmul.f32 %v1147_v2, %v685_v4 }
 0x244   : > { %v682_v7 = vpop.f32.mrf.mxu1 }
 0x245   : > { %v822_v8 = vadd.f32 %v821_v6, %v817_v47 }
 0x246   : > { %v1030_v9 = vpop.f32.mrf.mxu1 }
 0x247   : > { %v976_v10 = vmul.f32 -1.442695, %v822_v8 }
 0x249   : > { %1148 = vpow2.f32 %v976_v10 }
 0x256   : > { %v1149_v11 = vpop.eup %1148 }
 0x257   : > { %v826_v12 = vadd.f32 1.0, %v1149_v11 }
 0x259   : > { %1150 = vrcp.f32 %v826_v12 }
 0x266   : > { %v1151_v13 = vpop.eup %1150 }
 0x267   : > { %829 = vst [vmem:[%s281_s12] sm:$0xff] %v1151_v13 }
 0x268   : > { %1273 = shalt.err (!%p1270_p7)
}
 0x269   : > { %s1274_s27 = scalar_lea.hbm %s1645_s10, 128  ;;  %s1278_s29 = scalar_lea.hbm %s1686_s4, 256 }
 0x26a   : > { %p1275_p10 = scmp.ne.s32.totalorder %s1645_s10, %s1274_s27  ;;  %p1279_p11 = scmp.lt.s32.totalorder %s1645_s10, %s1686_s4 }
 0x26b   : > { %p1280_p2 = scmp.lt.s32.totalorder %s1278_s29, %s1274_s27 }
 0x26c   : > { %p1276_p0 = pnand %p1275_p10, %p1708_p3 }
 0x26d   : > { %p1281_p6 = por %p1280_p2, %p1279_p11 }
 0x26e   : > { %p1277_p8 = pneg %p1276_p0 }
 0x270   : > { %p1282_p12 = pnand %p1281_p6, %p1277_p8 }
 0x272   : > { %1285 = shalt.err (!%p1282_p12)
}
 0x273   : > { %1078 = dma.vmem_to_hbm [thread:$0]  (%p1708_p3), %s845_s26, 128, %s1645_s10, %s831_s11  }
 0x274 PF: > { %s856_s23 = sand.u32 1, %s1324_s15   ;;  %p1709_p9 = scmp.ne.s32.totalorder %s1694_s22, 0 }
 0x275   : > { %p1710_p13 = scmp.ge.s32.totalorder %s1336_s18, 2  ;;  %s857_s8 = scalar_lea.sflag [#allocation4], %s856_s23 }
 0x277   : > { %p1095_p5 = pnand %p1710_p13, %p1709_p9 }
 0x279   : > { %p1096_p1 = pneg %p1095_p5 }
 0x27b   : > { %1319 = dma.done.wait (%p1096_p1), %s857_s8, 128  }
 0x27c   : > { %1321 = vsyncadd (%p1096_p1), %s857_s8, 4294967168  ;;  %p21_p4 = scmp.ge.s32.totalorder %s1448_s13, 4   ;;  %s1711_s15 = smov %s1328_s16 }
 0x27d   : > { %s1712_s16 = smov %s1332_s17  ;;  %s1713_s17 = smov %s1457_s24 }
 0x27e   : > { %s1714_s18 = smov %s1448_s13  ;;  %23 = sbr.rel (!%p21_p4) target bundleno = 11 (0xb), region = 102 }
 0x283   :  { %862 = vsyncpa [#allocation3], 1 }
 0x284   :  { %864 = vsyncpa [#allocation3 + $0x1], 1 }
 0x285   :  { %865 = vsyncpa [#allocation6], 1 }
 0x286   :  { %867 = vsyncpa [#allocation6 + $0x1], 1 }
 0x287   :  { %868 = vsyncpa [#allocation9], 1 }
 0x288   :  { %869 = vsyncpa [#allocation4], 1 }
 0x289   :  { %871 = vsyncpa [#allocation4 + $0x1], 1 }

</bundles_post_ra>
